<compile_context>
chip_gen: v5e
topology: v5e:2x2
jax: 0.10.0
libtpu: 0.0.40
codegen_flags: <defaults>
</compile_context>

<pallas_src>
import functools
import numpy as np

import jax
import jax.numpy as jnp
from jax.experimental import pallas as pl
from jax.experimental.pallas import tpu as pltpu


_SUBLANES = 8
_LANES = 128
_ANCHOR_ALIGN = _SUBLANES * _LANES  # pad anchor axis to a multiple of 1024


# ----------------------------------------------------------------------------
# One-time anchor generation (host-side numpy, exactly as in the reference).
# ----------------------------------------------------------------------------
def generate_anchors(base_size=16, ratios=None, scales=None):
    if ratios is None:
        ratios = np.array([0.5, 1, 2])
    if scales is None:
        scales = np.array([2 ** 0, 2 ** (1.0 / 3.0), 2 ** (2.0 / 3.0)])
    num_anchors = len(ratios) * len(scales)
    anchors = np.zeros((num_anchors, 4))
    anchors[:, 2:] = base_size * np.tile(scales, (2, len(ratios))).T
    areas = anchors[:, 2] * anchors[:, 3]
    anchors[:, 2] = np.sqrt(areas / np.repeat(ratios, len(scales)))
    anchors[:, 3] = anchors[:, 2] * np.repeat(ratios, len(scales))
    anchors[:, 0::2] -= np.tile(anchors[:, 2] * 0.5, (2, 1)).T
    anchors[:, 1::2] -= np.tile(anchors[:, 3] * 0.5, (2, 1)).T
    return anchors


def shift(shape, stride, anchors):
    shift_x = (np.arange(0, shape[1]) + 0.5) * stride
    shift_y = (np.arange(0, shape[0]) + 0.5) * stride
    shift_x, shift_y = np.meshgrid(shift_x, shift_y)
    shifts = np.vstack((shift_x.ravel(), shift_y.ravel(),
                        shift_x.ravel(), shift_y.ravel())).transpose()
    A = anchors.shape[0]
    K = shifts.shape[0]
    all_anchors = anchors.reshape((1, A, 4)) + shifts.reshape((1, K, 4)).transpose((1, 0, 2))
    all_anchors = all_anchors.reshape((K * A, 4))
    return all_anchors


# ----------------------------------------------------------------------------
# Pallas kernel: per-anchor camera-space filter + OR over object types.
# Anchor axis is packed dense as [8 sublanes, L lanes].
# ----------------------------------------------------------------------------
def _pick_tile_l(L, num_types, batch, max_block_bytes=4 << 20):
    """Largest lane tile (multiple of 128) along the packed-anchor axis.

    Prefers ONE block covering the whole array (fewest grid steps wins on the
    single-TC v5e/v6e, and this kernel is launch/overhead bound on v7x too).
    Falls back to the largest 128-multiple divisor of L whose per-step working
    set stays under max_block_bytes, so the double-buffered footprint sits
    comfortably inside the 32 MiB scoped-VMEM limit on every generation.
    """
    per_lane = (2 + num_types) * _SUBLANES * 4 + batch * _SUBLANES  # f32 in, i8 out
    max_l = max(_LANES, (max_block_bytes // per_lane) // _LANES * _LANES)
    if L <= max_l:
        return L
    best = _LANES
    t = _LANES
    while t <= min(L, max_l):
        if L % t == 0:
            best = t
        t += _LANES
    return best


def _useful_mask_kernel(calib_ref, centers_ref, z_ref, mask_ref, *,
                        y_min, y_max, x_thr, batch, num_types):
    # calib_ref:   [B, 3]       f32 SMEM, rows = (fy, cy, cx)
    # centers_ref: [2, 8, TL]   f32 VMEM, rows = (x_center, y_center), dense pack
    # z_ref:       [T, 8, TL]   f32 VMEM, per-type anchor prior depth, same pack
    # mask_ref:    [B, 8, TL]   int8 VMEM output
    for b in range(batch):                               # static small B -> unrolled
        fy = calib_ref[b, 0]
        cy = calib_ref[b, 1]
        cx = calib_ref[b, 2]
        # Scalar threshold products (scalar ALU, free).  Assumes fy > 0, which
        # holds for real camera intrinsics.  The reference divides BOTH
        # world_x3d and world_y3d by fy; multiplying all thresholds by fy
        # preserves that quirk (up to fp rounding) with no per-element divides.
        y_lo = y_min * fy
        y_hi = y_max * fy
        x_th = x_thr * fy
        dx = centers_ref[0] - cx                         # [8, TL] dense vregs
        dy = centers_ref[1] - cy
        any_t = None
        for t in range(num_types):                       # static small T -> unrolled
            zt = z_ref[t]                                # [8, TL]
            wx = dx * zt                                 # == x_c*z - cx*z
            wy = dy * zt                                 # == y_c*z - cy*z
            cond = (wy > y_lo) & (wy < y_hi) & (jnp.abs(wx) < x_th)
            any_t = cond if any_t is None else (any_t | cond)   # lane-wise OR (VPU)
        # Store this batch row immediately: bounds live ranges, store slot has
        # plenty of slack.
        mask_ref[b] = any_t.astype(jnp.int8)


def compute_useful_mask_pallas(centers_dense, z_dense, fycycx, y_min, y_max, x_thr, n_valid):
    """centers_dense: [2,8,L] f32; z_dense: [T,8,L] f32; fycycx: [B,3] f32."""
    T, _, L = z_dense.shape
    B = fycycx.shape[0]
    tile_l = _pick_tile_l(L, T, B)

    kernel = functools.partial(_useful_mask_kernel,
                               y_min=float(y_min), y_max=float(y_max),
                               x_thr=float(x_thr), batch=int(B), num_types=int(T))

    mask_i8 = pl.pallas_call(
        kernel,
        out_shape=jax.ShapeDtypeStruct((B, _SUBLANES, L), jnp.int8),
        grid=(L // tile_l,),
        in_specs=[
            pl.BlockSpec(memory_space=pltpu.MemorySpace.SMEM),          # calib scalars
            pl.BlockSpec((2, _SUBLANES, tile_l), lambda j: (0, 0, j)),  # anchor centers
            pl.BlockSpec((T, _SUBLANES, tile_l), lambda j: (0, 0, j)),  # prior depths
        ],
        out_specs=pl.BlockSpec((B, _SUBLANES, tile_l), lambda j: (0, 0, j)),
        compiler_params=pltpu.CompilerParams(
            dimension_semantics=("parallel",),
            vmem_limit_bytes=32 << 20),                                 # covers v5e's 16 MiB default
    )(fycycx.astype(jnp.float32), centers_dense, z_dense)

    # Row-major reshape matches the host packing; padded lanes are already
    # False in-kernel, the slice just restores the logical [B, N] shape.
    return mask_i8.reshape(B, -1)[:, :n_valid].astype(jnp.bool_)


def compute_useful_mask_jnp(x_center, y_center, z, fycycx, y_min, y_max, x_thr):
    """Pure-jnp fallback (exact reference formula) for tiny anchor counts."""
    fy = fycycx[:, 0][:, None, None]
    cy = fycycx[:, 1][:, None, None]
    cx = fycycx[:, 2][:, None, None]
    zb = z[None]                                             # [1, T, N]
    wx = (x_center[None, None, :] * zb - cx * zb) / fy
    wy = (y_center[None, None, :] * zb - cy * zb) / fy
    return jnp.any((wy > y_min) & (wy < y_max) & (jnp.abs(wx) < x_thr), axis=1)


# ----------------------------------------------------------------------------
# Module wrapper.  Anchor grid generation + prior gather + padding/repacking
# are static per image shape -> computed once in numpy and cached (mirrors the
# reference's `self.shape` caching).
# ----------------------------------------------------------------------------
class AnchorsPallas:
    def __init__(self, pyramid_levels, strides, sizes, ratios, scales, obj_types,
                 anchors_mean_original, anchors_std_original,
                 filter_y_threshold_min_max=(-0.5, 1.8), filter_x_threshold=40.0,
                 min_anchors_for_pallas=4096):
        self.pyramid_levels = pyramid_levels
        self.strides = strides
        self.sizes = sizes
        self.ratios = ratios
        self.scales = scales
        self.obj_types = obj_types
        # [num_types, len(scales)*len(levels), len(ratios), 6]
        self.anchors_mean_original = anchors_mean_original
        self.anchors_std_original = anchors_std_original
        self.filter_y_threshold_min_max = filter_y_threshold_min_max
        self.filter_x_threshold = filter_x_threshold
        # Below this anchor count the fixed pallas_call/DMA setup cost dominates;
        # a fused XLA elementwise pass is faster.  Set 0 to force the kernel.
        self.min_anchors_for_pallas = min_anchors_for_pallas
        self._cache = None

    def anchors2indexes(self, anchors):
        sizes = np.sqrt((anchors[:, 2] - anchors[:, 0]) * (anchors[:, 3] - anchors[:, 1]))
        sizes_diff = sizes - (np.array(self.sizes) * np.array(self.scales))[:, np.newaxis]
        sizes_int = np.argmin(np.abs(sizes_diff), axis=0)
        ratio = (anchors[:, 3] - anchors[:, 1]) / (anchors[:, 2] - anchors[:, 0])
        ratio_diff = ratio - np.array(self.ratios)[:, np.newaxis]
        ratio_int = np.argmin(np.abs(ratio_diff), axis=0)
        return sizes_int, ratio_int

    # TODO(synk): the anchor grid build + anchors2indexes gather + .npy prior
    # loading is inherently host-side numpy (one-time, shape-dependent), as in
    # the reference module.
    def _prepare_static(self, image_hw):
        image_shape = np.array(image_hw)
        image_shapes = [(image_shape + 2 ** x - 1) // (2 ** x) for x in self.pyramid_levels]
        all_anchors = np.zeros((0, 4), dtype=np.float64)
        for idx, _p in enumerate(self.pyramid_levels):
            a = generate_anchors(base_size=self.sizes[idx],
                                 ratios=np.array(self.ratios),
                                 scales=np.array(self.scales))
            sa = shift(image_shapes[idx], self.strides[idx], a)
            all_anchors = np.append(all_anchors, sa, axis=0)
        N = all_anchors.shape[0]

        sizes_int, ratio_int = self.anchors2indexes(all_anchors)
        anchor_means_np = self.anchors_mean_original[:, sizes_int, ratio_int].astype(np.float32)  # [T,N,6]
        anchor_stds_np = self.anchors_std_original[:, sizes_int, ratio_int].astype(np.float32)    # [T,N,6]
        anchor_mean_std_np = np.transpose(
            np.stack([anchor_means_np, anchor_stds_np], axis=-1), (1, 0, 2, 3))                   # [N,T,6,2]
        T = anchor_means_np.shape[0]

        x_c = ((all_anchors[:, 0] + all_anchors[:, 2]) * 0.5).astype(np.float32)
        y_c = ((all_anchors[:, 1] + all_anchors[:, 3]) * 0.5).astype(np.float32)
        z_np = anchor_means_np[:, :, 0]                                                           # [T,N]

        # Pad the anchor axis to a multiple of 8*128 so it repacks into a fully
        # sublane/lane-dense [8, L] layout (L multiple of 128).
        n_pad = ((N + _ANCHOR_ALIGN - 1) // _ANCHOR_ALIGN) * _ANCHOR_ALIGN
        L = n_pad // _SUBLANES

        centers = np.zeros((2, n_pad), dtype=np.float32)
        centers[0, :N] = x_c
        centers[1, :N] = y_c
        # Modest sentinel on padded lanes: |wx| = |(1e9 - cx) * z| >> 40*fy so
        # the x-condition (and the AND) is always False; far from f32 overflow.
        centers[0, N:] = 1e9

        z_pad = np.ones((T, n_pad), dtype=np.float32)
        z_pad[:, :N] = z_np

        self._cache = dict(
            shape=tuple(image_hw), N=N, T=T,
            anchors=jnp.asarray(all_anchors.astype(np.float32))[None],       # [1, N, 4]
            anchor_mean_std=jnp.asarray(anchor_mean_std_np),                 # [N, T, 6, 2]
            centers_dense=jnp.asarray(centers.reshape(2, _SUBLANES, L)),     # [2, 8, L]
            z_dense=jnp.asarray(z_pad.reshape(T, _SUBLANES, L)),             # [T, 8, L]
            # unpadded copies for the small-N pure-jnp fallback
            x_center=jnp.asarray(x_c), y_center=jnp.asarray(y_c),
            z=jnp.asarray(z_np),
        )

    def __call__(self, image, calibs=None, is_filtering=True):
        hw = tuple(int(s) for s in image.shape[2:])
        if self._cache is None or self._cache["shape"] != hw:
            self._prepare_static(hw)
        c = self._cache

        if calibs is None or calibs.shape[0] == 0:
            return c["anchors"]
        B = calibs.shape[0]

        y_min, y_max = self.filter_y_threshold_min_max
        x_thr = self.filter_x_threshold

        if is_filtering:
            fy = calibs[:, 1, 1]
            cy = calibs[:, 1, 2]
            cx = calibs[:, 0, 2]
            fycycx = jnp.stack([fy, cy, cx], axis=1).astype(jnp.float32)     # [B, 3]
            if c["N"] >= self.min_anchors_for_pallas:
                useful_mask = compute_useful_mask_pallas(
                    c["centers_dense"], c["z_dense"], fycycx,
                    y_min, y_max, x_thr, c["N"])
            else:
                useful_mask = compute_useful_mask_jnp(
                    c["x_center"], c["y_center"], c["z"], fycycx,
                    y_min, y_max, x_thr)
        else:
            useful_mask = jnp.ones((B, c["N"]), dtype=jnp.bool_)

        return c["anchors"], useful_mask, c["anchor_mean_std"]


# ----------------------------------------------------------------------------
if __name__ == "__main__":
    key = jax.random.PRNGKey(0)
    k_img, k_mean, k_z, k_std = jax.random.split(key, 4)

    # Small-but-consistent config (single pyramid level, as used by MonoDTR).
    B, C, H, W = 2, 3, 32, 32
    pyramid_levels = [3]
    strides = [2 ** l for l in pyramid_levels]            # [8]
    sizes = [24]
    ratios = [0.5, 1.0, 2.0]
    scales = [2.0 ** (i / 4.0) for i in range(8)]
    obj_types = ["Car", "Pedestrian"]
    T = len(obj_types)
    S = len(scales) * len(pyramid_levels)
    R = len(ratios)

    # Deterministic synthetic anchor priors (normally loaded from .npy files).
    mean_prior = np.array(jax.random.uniform(k_mean, (T, S, R, 6), minval=-1.0, maxval=1.0),
                          dtype=np.float64)
    mean_prior[..., 0] = np.array(jax.random.uniform(k_z, (T, S, R), minval=5.0, maxval=50.0))
    std_prior = np.array(jax.random.uniform(k_std, (T, S, R, 6), minval=0.1, maxval=1.0),
                         dtype=np.float64)

    # min_anchors_for_pallas=0: force the Pallas path even at this tiny demo
    # size (the production heuristic would use the fused-jnp path below ~4096).
    module = AnchorsPallas(pyramid_levels, strides, sizes, ratios, scales, obj_types,
                           mean_prior, std_prior, min_anchors_for_pallas=0)

    # Inputs: NCHW image (only shape matters) + per-batch P2 calibration [B, 3, 4].
    image = jax.random.normal(k_img, (B, C, H, W), dtype=jnp.float32)
    P2_np = np.tile(np.array([[700.0, 0.0, W / 2.0, 44.0],
                              [0.0, 700.0, H / 2.0, 0.2],
                              [0.0, 0.0, 1.0, 0.003]], dtype=np.float32), (B, 1, 1))
    P2_np[1, 0, 2] += 2.0
    P2_np[1, 1, 1] -= 50.0
    P2 = jnp.asarray(P2_np)

    anchors_out, useful_mask, anchor_mean_std = module(image, P2, is_filtering=True)
    jax.block_until_ready((anchors_out, useful_mask, anchor_mean_std))

    # --- pure-JAX reference for the Pallas-computed mask (spec semantics) ---
    x_center = jnp.mean(anchors_out[0, :, 0:4:2], axis=1)          # [N]
    y_center = jnp.mean(anchors_out[0, :, 1:4:2], axis=1)          # [N]
    z = anchor_mean_std[:, :, 0, 0].T                               # [T, N]
    fy_r = P2[:, 1:2, 1:2]
    cy_r = P2[:, 1:2, 2:3]
    cx_r = P2[:, 0:1, 2:3]
    wx = (x_center * z - cx_r * z) / fy_r                           # [B, T, N]
    wy = (y_center * z - cy_r * z) / fy_r
    ref_mask = jnp.any((wy > -0.5) & (wy < 1.8) & (jnp.abs(wx) < 40.0), axis=1)

    assert anchors_out.shape == (1, 384, 4)
    assert useful_mask.shape == (B, 384) and useful_mask.dtype == jnp.bool_
    assert anchor_mean_std.shape == (384, T, 6, 2)
    assert int(jnp.sum(ref_mask != useful_mask)) == 0

    print("KERNEL_OK")
</pallas_src>

<mosaic_0001>
module attributes {stable_mosaic.version = 11 : i64} {
  func.func @_useful_mask_kernel(%arg0: i32, %arg1: memref<2x3xf32, #tpu.memory_space<smem>>, %arg2: memref<2x8x128xf32, #tpu.memory_space<vmem>>, %arg3: memref<2x8x128xf32, #tpu.memory_space<vmem>>, %arg4: memref<2x8x128xi8, #tpu.memory_space<vmem>>) attributes {dimension_semantics = [#tpu.dimension_semantics<parallel>], iteration_bounds = array<i64: 1>, scalar_prefetch = 0 : i64, scratch_operands = 0 : i64, tpu.core_type = #tpu.core_type<tc>, window_params = [{transform_indices = @transform_0, window_bounds = array<i64: 2, 3>}, {transform_indices = @transform_1, window_bounds = array<i64: 2, 8, 128>}, {transform_indices = @transform_2, window_bounds = array<i64: 2, 8, 128>}, {transform_indices = @transform_3, window_bounds = array<i64: 2, 8, 128>}]} {
    %c0 = arith.constant 0 : index
    %c0_0 = arith.constant 0 : index
    %0 = memref.load %arg1[%c0, %c0_0] : memref<2x3xf32, #tpu.memory_space<smem>>
    %c0_1 = arith.constant 0 : index
    %c1 = arith.constant 1 : index
    %1 = memref.load %arg1[%c0_1, %c1] : memref<2x3xf32, #tpu.memory_space<smem>>
    %c0_2 = arith.constant 0 : index
    %c2 = arith.constant 2 : index
    %2 = memref.load %arg1[%c0_2, %c2] : memref<2x3xf32, #tpu.memory_space<smem>>
    %cst = arith.constant -5.000000e-01 : f32
    %3 = arith.mulf %cst, %0 : f32
    %cst_3 = arith.constant 1.800000e+00 : f32
    %4 = arith.mulf %cst_3, %0 : f32
    %cst_4 = arith.constant 4.000000e+01 : f32
    %5 = arith.mulf %cst_4, %0 : f32
    %c0_5 = arith.constant 0 : index
    %c0_6 = arith.constant 0 : index
    %c0_7 = arith.constant 0 : index
    %6 = vector.load %arg2[%c0_5, %c0_6, %c0_7] : memref<2x8x128xf32, #tpu.memory_space<vmem>>, vector<1x8x128xf32>
    %7 = vector.shape_cast %6 : vector<1x8x128xf32> to vector<8x128xf32>
    %8 = vector.broadcast %2 : f32 to vector<8x128xf32>
    %9 = arith.subf %7, %8 : vector<8x128xf32>
    %c1_8 = arith.constant 1 : index
    %c0_9 = arith.constant 0 : index
    %c0_10 = arith.constant 0 : index
    %10 = vector.load %arg2[%c1_8, %c0_9, %c0_10] : memref<2x8x128xf32, #tpu.memory_space<vmem>>, vector<1x8x128xf32>
    %11 = vector.shape_cast %10 : vector<1x8x128xf32> to vector<8x128xf32>
    %12 = vector.broadcast %1 : f32 to vector<8x128xf32>
    %13 = arith.subf %11, %12 : vector<8x128xf32>
    %c0_11 = arith.constant 0 : index
    %c0_12 = arith.constant 0 : index
    %c0_13 = arith.constant 0 : index
    %14 = vector.load %arg3[%c0_11, %c0_12, %c0_13] : memref<2x8x128xf32, #tpu.memory_space<vmem>>, vector<1x8x128xf32>
    %15 = vector.shape_cast %14 : vector<1x8x128xf32> to vector<8x128xf32>
    %16 = arith.mulf %9, %15 : vector<8x128xf32>
    %17 = arith.mulf %13, %15 : vector<8x128xf32>
    %18 = vector.broadcast %3 : f32 to vector<8x128xf32>
    %19 = arith.cmpf ogt, %17, %18 : vector<8x128xf32>
    %20 = vector.broadcast %4 : f32 to vector<8x128xf32>
    %21 = arith.cmpf olt, %17, %20 : vector<8x128xf32>
    %22 = arith.andi %19, %21 : vector<8x128xi1>
    %23 = math.absf %16 : vector<8x128xf32>
    %24 = vector.broadcast %5 : f32 to vector<8x128xf32>
    %25 = arith.cmpf olt, %23, %24 : vector<8x128xf32>
    %26 = arith.andi %22, %25 : vector<8x128xi1>
    %c1_14 = arith.constant 1 : index
    %c0_15 = arith.constant 0 : index
    %c0_16 = arith.constant 0 : index
    %27 = vector.load %arg3[%c1_14, %c0_15, %c0_16] : memref<2x8x128xf32, #tpu.memory_space<vmem>>, vector<1x8x128xf32>
    %28 = vector.shape_cast %27 : vector<1x8x128xf32> to vector<8x128xf32>
    %29 = arith.mulf %9, %28 : vector<8x128xf32>
    %30 = arith.mulf %13, %28 : vector<8x128xf32>
    %31 = vector.broadcast %3 : f32 to vector<8x128xf32>
    %32 = arith.cmpf ogt, %30, %31 : vector<8x128xf32>
    %33 = vector.broadcast %4 : f32 to vector<8x128xf32>
    %34 = arith.cmpf olt, %30, %33 : vector<8x128xf32>
    %35 = arith.andi %32, %34 : vector<8x128xi1>
    %36 = math.absf %29 : vector<8x128xf32>
    %37 = vector.broadcast %5 : f32 to vector<8x128xf32>
    %38 = arith.cmpf olt, %36, %37 : vector<8x128xf32>
    %39 = arith.andi %35, %38 : vector<8x128xi1>
    %40 = arith.ori %26, %39 : vector<8x128xi1>
    %41 = arith.extui %40 : vector<8x128xi1> to vector<8x128xi8>
    %c0_17 = arith.constant 0 : index
    %c0_18 = arith.constant 0 : index
    %c0_19 = arith.constant 0 : index
    %42 = vector.load %arg4[%c0_17, %c0_18, %c0_19] : memref<2x8x128xi8, #tpu.memory_space<vmem>>, vector<1x8x128xi8>
    %43 = vector.shape_cast %42 : vector<1x8x128xi8> to vector<8x128xi8>
    %44 = vector.shape_cast %41 : vector<8x128xi8> to vector<1x8x128xi8>
    tpu.vector_store %arg4[%c0_17, %c0_18, %c0_19], %44 {strides = array<i32>} : memref<2x8x128xi8, #tpu.memory_space<vmem>>, vector<1x8x128xi8>,
    %c1_20 = arith.constant 1 : index
    %c0_21 = arith.constant 0 : index
    %45 = memref.load %arg1[%c1_20, %c0_21] : memref<2x3xf32, #tpu.memory_space<smem>>
    %c1_22 = arith.constant 1 : index
    %c1_23 = arith.constant 1 : index
    %46 = memref.load %arg1[%c1_22, %c1_23] : memref<2x3xf32, #tpu.memory_space<smem>>
    %c1_24 = arith.constant 1 : index
    %c2_25 = arith.constant 2 : index
    %47 = memref.load %arg1[%c1_24, %c2_25] : memref<2x3xf32, #tpu.memory_space<smem>>
    %cst_26 = arith.constant -5.000000e-01 : f32
    %48 = arith.mulf %cst_26, %45 : f32
    %cst_27 = arith.constant 1.800000e+00 : f32
    %49 = arith.mulf %cst_27, %45 : f32
    %cst_28 = arith.constant 4.000000e+01 : f32
    %50 = arith.mulf %cst_28, %45 : f32
    %c0_29 = arith.constant 0 : index
    %c0_30 = arith.constant 0 : index
    %c0_31 = arith.constant 0 : index
    %51 = vector.load %arg2[%c0_29, %c0_30, %c0_31] : memref<2x8x128xf32, #tpu.memory_space<vmem>>, vector<1x8x128xf32>
    %52 = vector.shape_cast %51 : vector<1x8x128xf32> to vector<8x128xf32>
    %53 = vector.broadcast %47 : f32 to vector<8x128xf32>
    %54 = arith.subf %52, %53 : vector<8x128xf32>
    %c1_32 = arith.constant 1 : index
    %c0_33 = arith.constant 0 : index
    %c0_34 = arith.constant 0 : index
    %55 = vector.load %arg2[%c1_32, %c0_33, %c0_34] : memref<2x8x128xf32, #tpu.memory_space<vmem>>, vector<1x8x128xf32>
    %56 = vector.shape_cast %55 : vector<1x8x128xf32> to vector<8x128xf32>
    %57 = vector.broadcast %46 : f32 to vector<8x128xf32>
    %58 = arith.subf %56, %57 : vector<8x128xf32>
    %c0_35 = arith.constant 0 : index
    %c0_36 = arith.constant 0 : index
    %c0_37 = arith.constant 0 : index
    %59 = vector.load %arg3[%c0_35, %c0_36, %c0_37] : memref<2x8x128xf32, #tpu.memory_space<vmem>>, vector<1x8x128xf32>
    %60 = vector.shape_cast %59 : vector<1x8x128xf32> to vector<8x128xf32>
    %61 = arith.mulf %54, %60 : vector<8x128xf32>
    %62 = arith.mulf %58, %60 : vector<8x128xf32>
    %63 = vector.broadcast %48 : f32 to vector<8x128xf32>
    %64 = arith.cmpf ogt, %62, %63 : vector<8x128xf32>
    %65 = vector.broadcast %49 : f32 to vector<8x128xf32>
    %66 = arith.cmpf olt, %62, %65 : vector<8x128xf32>
    %67 = arith.andi %64, %66 : vector<8x128xi1>
    %68 = math.absf %61 : vector<8x128xf32>
    %69 = vector.broadcast %50 : f32 to vector<8x128xf32>
    %70 = arith.cmpf olt, %68, %69 : vector<8x128xf32>
    %71 = arith.andi %67, %70 : vector<8x128xi1>
    %c1_38 = arith.constant 1 : index
    %c0_39 = arith.constant 0 : index
    %c0_40 = arith.constant 0 : index
    %72 = vector.load %arg3[%c1_38, %c0_39, %c0_40] : memref<2x8x128xf32, #tpu.memory_space<vmem>>, vector<1x8x128xf32>
    %73 = vector.shape_cast %72 : vector<1x8x128xf32> to vector<8x128xf32>
    %74 = arith.mulf %54, %73 : vector<8x128xf32>
    %75 = arith.mulf %58, %73 : vector<8x128xf32>
    %76 = vector.broadcast %48 : f32 to vector<8x128xf32>
    %77 = arith.cmpf ogt, %75, %76 : vector<8x128xf32>
    %78 = vector.broadcast %49 : f32 to vector<8x128xf32>
    %79 = arith.cmpf olt, %75, %78 : vector<8x128xf32>
    %80 = arith.andi %77, %79 : vector<8x128xi1>
    %81 = math.absf %74 : vector<8x128xf32>
    %82 = vector.broadcast %50 : f32 to vector<8x128xf32>
    %83 = arith.cmpf olt, %81, %82 : vector<8x128xf32>
    %84 = arith.andi %80, %83 : vector<8x128xi1>
    %85 = arith.ori %71, %84 : vector<8x128xi1>
    %86 = arith.extui %85 : vector<8x128xi1> to vector<8x128xi8>
    %c1_41 = arith.constant 1 : index
    %c0_42 = arith.constant 0 : index
    %c0_43 = arith.constant 0 : index
    %87 = vector.load %arg4[%c1_41, %c0_42, %c0_43] : memref<2x8x128xi8, #tpu.memory_space<vmem>>, vector<1x8x128xi8>
    %88 = vector.shape_cast %87 : vector<1x8x128xi8> to vector<8x128xi8>
    %89 = vector.shape_cast %86 : vector<8x128xi8> to vector<1x8x128xi8>
    tpu.vector_store %arg4[%c1_41, %c0_42, %c0_43], %89 {strides = array<i32>} : memref<2x8x128xi8, #tpu.memory_space<vmem>>, vector<1x8x128xi8>,
    return
  }
  func.func @transform_0(%arg0: i32) -> (i32, i32) {
    %c0_i32 = arith.constant 0 : i32
    %c0_i32_0 = arith.constant 0 : i32
    %c0_i32_1 = arith.constant 0 : i32
    return %c0_i32, %c0_i32_0 : i32, i32
  }
  func.func @transform_1(%arg0: i32) -> (i32, i32, i32) {
    %c0_i32 = arith.constant 0 : i32
    %c0_i32_0 = arith.constant 0 : i32
    %c0_i32_1 = arith.constant 0 : i32
    return %c0_i32, %c0_i32_0, %arg0 : i32, i32, i32
  }
  func.func @transform_2(%arg0: i32) -> (i32, i32, i32) {
    %c0_i32 = arith.constant 0 : i32
    %c0_i32_0 = arith.constant 0 : i32
    %c0_i32_1 = arith.constant 0 : i32
    return %c0_i32, %c0_i32_0, %arg0 : i32, i32, i32
  }
  func.func @transform_3(%arg0: i32) -> (i32, i32, i32) {
    %c0_i32 = arith.constant 0 : i32
    %c0_i32_0 = arith.constant 0 : i32
    %c0_i32_1 = arith.constant 0 : i32
    return %c0_i32, %c0_i32_0, %arg0 : i32, i32, i32
  }
}

</mosaic_0001>

<bundles_post_ra>
// kernel: tpu_custom_call.1
= control target key start
LH: loop header
LB: loop body
LE: loop exit
PB: predicated region body
PF: predicated region fallthrough
CT: control target
= control target key end

     0   :  { %8 = vsyncpa [#allocation5], 0  ;;  %s335_s0 = inlined_call_operand.hbm [shape: f32[2,3], index: 0, kind: input, shape index: {}]   ;;  %s336_s1 = inlined_call_operand.hbm [shape: f32[2,8,128], index: 1, kind: input, shape index: {}]   ;;  %s337_s2 = inlined_call_operand.hbm [shape: f32[2,8,128], index: 2, kind: input, shape index: {}]   ;;  %s338_s3 = inlined_call_operand.hbm [shape: s8[2,8,128], index: 3, kind: output, shape index: {}]  }
   0x1   :  { %9 = vsyncpa [#allocation3], 0 }
   0x2   :  { %10 = vsyncpa [#allocation8], 0 }
   0x3   :  { %11 = vsyncpa [#allocation4], 0  ;;  %s17_s14 = sshll.u32 %s335_s0, 4  ;;  %s25_s17 = sshll.u32 %s336_s1, 4  ;;  %s18_s14 = int_to_ptr.hbm [resolvable:$true] %s17_s14  ;;  %s26_s17 = int_to_ptr.hbm [resolvable:$true] %s25_s17 }
   0x4   :  { %s274_s18 = smov [#allocation2]   ;;  %s275_s19 = smov [#allocation6]  }
   0x5   :  { %20 = dma.hbm_to_smem %s18_s14, 32, %s274_s18, [#allocation5]  }
   0x6   :  { %s27_s20 = sshll.u32 %s275_s19, 4  ;;  %s276_s21 = smov 128   ;;  %s28_s20 = int_to_ptr.vmem [resolvable:$true] %s27_s20 }
   0x7   :  { %s277_s22 = smov 8   ;;  %s38_s25 = sshll.u32 %s337_s2, 4  ;;  %s39_s25 = int_to_ptr.hbm [resolvable:$true] %s38_s25 }
   0x8   :  { %33 = dma.hbm_to_vmem [thread:$0]  %s26_s17, 256, %s28_s20, [#allocation3], %s276_s21, %s276_s21, %s277_s22  }
   0x9   :  { %s278_s0 = smov [#allocation7]  }
   0xa   :  { %s40_s26 = sshll.u32 %s278_s0, 4  ;;  %s41_s26 = int_to_ptr.vmem [resolvable:$true] %s40_s26 }
   0xb   :  { %46 = dma.hbm_to_vmem [thread:$0]  %s39_s25, 256, %s41_s26, [#allocation8], %s276_s21, %s276_s21, %s277_s22  }
   0xc   :  { %266 = dma.done.wait [#allocation5], 32  }
   0xd   :  { %267 = vsyncadd [#allocation5], 4294967264 }
   0xe   :  { %268 = dma.done.wait [#allocation3], 256  }
   0xf   :  { %269 = vsyncadd [#allocation3], 4294967040 }
  0x10   :  { %270 = dma.done.wait [#allocation8], 256  }
  0x11   :  { %271 = vsyncadd [#allocation8], 4294967040 }
  0x12   :  { %59 = sfence }
  0x13   :  { %s62_s1 = sld [smem:[#allocation2]]  ;;  %v72_v0 = vld [vmem:[#allocation6 + $0x8] sm:$0xff]  ;;  %v68_v1 = vld [vmem:[#allocation6] sm:$0xff]  ;;  %v75_v3 = vld [vmem:[#allocation7] sm:$0xff]  ;;  %v279_v32 = vmov 0   ;;  %s280_s10 = smov [#allocation9]  }
  0x14   :  { %s168_s27 = sld [smem:[#allocation2 + $0x1]]  ;;  %v88_v4 = vld [vmem:[#allocation7 + $0x8] sm:$0xff]  ;;  %s151_s11 = sshll.u32 %s280_s10, 4  ;;  %s152_s11 = int_to_ptr.vmem [resolvable:$true] %s151_s11 }
  0x15   :  { %s169_s28 = sld [smem:[#allocation2 + $0x2]]  ;;  %s153_s14 = sshll.u32 %s338_s3, 4  ;;  %s154_s14 = int_to_ptr.hbm [resolvable:$true] %s153_s14 }
  0x16   :  { %s312_s29 = sld [smem:[#allocation2 + $0x80]]  ;;  %s281_s15 = smov 32  }
  0x17   :  { %s171_s30 = sld [smem:[#allocation2 + $0x81]]  ;;  %s282_s16 = smov 2  }
  0x18   :  { %s314_s2 = sld [smem:[#allocation2 + $0x82]] }
  0x19   :  { %s65_s4 = smul.f32 -0.5, %s62_s1 }
  0x1a   :  { %s66_s5 = smul.f32 1.8, %s62_s1  ;;  %v73_v2 = vstv %s168_s27 }
  0x1b   :  { %s67_s6 = smul.f32 40.0, %s62_s1  ;;  %v69_v5 = vstv %s169_s28  ;;  %v74_v6 = vsub.f32 %v72_v0, %v73_v2  ;;  %v78_v8 = vstv %s65_s4 }
  0x1c   :  { %v70_v7 = vsub.f32 %v68_v1, %v69_v5  ;;  %v80_v9 = vstv %s66_s5  ;;  %s108_s7 = smul.f32 -0.5, %s312_s29 }
  0x1d   :  { %v77_v10 = vmul.f32 %v75_v3, %v74_v6  ;;  %v84_v11 = vstv %s67_s6  ;;  %v90_v12 = vmul.f32 %v88_v4, %v74_v6  ;;  %s109_s8 = smul.f32 1.8, %s312_s29  ;;  %v115_v13 = vstv %s171_s30 }
  0x1e   :  { %v76_v14 = vmul.f32 %v75_v3, %v70_v7  ;;  %v89_v15 = vmul.f32 %v88_v4, %v70_v7  ;;  %v112_v16 = vstv %s314_s2  ;;  %v116_v17 = vsub.f32 %v72_v0, %v115_v13  ;;  %s110_s9 = smul.f32 40.0, %s312_s29 }
  0x1f   :  { %vm79_vm0 = vcmp.gt.f32.partialorder %v77_v10, %v78_v8  ;;  %vm81_vm1 = vcmp.lt.f32.partialorder %v77_v10, %v80_v9  ;;  %vm91_vm2 = vcmp.gt.f32.partialorder %v90_v12, %v78_v8  ;;  %vm92_vm3 = vcmp.lt.f32.partialorder %v90_v12, %v80_v9 }
  0x20   :  { %vm320_vm4 = vmand %vm79_vm0, %vm81_vm1  ;;  %v83_v19 = vand.u32 2147483647, %v76_v14  ;;  %v94_v20 = vand.u32 2147483647, %v89_v15  ;;  %v113_v21 = vsub.f32 %v68_v1, %v112_v16  ;;  %v119_v22 = vmul.f32 %v116_v17, %v75_v3 }
  0x21   :  { %vm324_vm5 = vmand %vm91_vm2, %vm92_vm3  ;;  %v120_v24 = vstv %s108_s7  ;;  %v122_v25 = vstv %s109_s8  ;;  %v131_v27 = vmul.f32 %v116_v17, %v88_v4  ;;  %v126_v28 = vstv %s110_s9 }
  0x22   :  { %vm85_vm6 = vcmp.lt.f32.partialorder %v83_v19, %v84_v11  ;;  %vm95_vm7 = vcmp.lt.f32.partialorder %v94_v20, %v84_v11  ;;  %v118_v26 = vmul.f32 %v113_v21, %v75_v3  ;;  %v130_v29 = vmul.f32 %v113_v21, %v88_v4 }
  0x23   :  { %vm86_vm8 = vmand %vm320_vm4, %vm85_vm6  ;;  %vm121_vm10 = vcmp.gt.f32.partialorder %v119_v22, %v120_v24  ;;  %vm123_vm11 = vcmp.lt.f32.partialorder %v119_v22, %v122_v25  ;;  %vm132_vm15 = vcmp.gt.f32.partialorder %v131_v27, %v120_v24  ;;  %vm133_vm0 = vcmp.lt.f32.partialorder %v131_v27, %v122_v25 }
  0x24   :  { %vm96_vm9 = vmand %vm324_vm5, %vm95_vm7  ;;  %v125_v30 = vand.u32 2147483647, %v118_v26  ;;  %v135_v31 = vand.u32 2147483647, %v130_v29 }
  0x25   :  { %vm97_vm12 = vmor %vm86_vm8, %vm96_vm9 }
  0x26   :  { %vm98_vm13 = vmpackc.low %vm97_vm12, %vm97_vm12  ;;  %vm127_vm14 = vcmp.lt.f32.partialorder %v125_v30, %v126_v28  ;;  %vm136_vm2 = vcmp.lt.f32.partialorder %v135_v31, %v126_v28 }
  0x27   :  { %v99_v33 = vsel %vm98_vm13, 16711935, %v279_v32  ;;  %vm124_vm1 = vmand %vm121_vm10, %vm123_vm11 }
  0x28   :  { %v101_v34 = vpack.c.b8 %v99_v33, %v99_v33  ;;  %vm128_vm3 = vmand %vm124_vm1, %vm127_vm14 }
  0x29   :  { %vm134_vm4 = vmand %vm132_vm15, %vm133_vm0 }
  0x2a   :  { %vm102_vm6 = vnez %v101_v34  ;;  %vm137_vm5 = vmand %vm134_vm4, %vm136_vm2 }
  0x2b   :  { %v103_v35 = vsel %vm102_vm6, 16843009, %v279_v32  ;;  %vm138_vm7 = vmor %vm128_vm3, %vm137_vm5 }
  0x2c   :  { %104 = vst [vmem:[#allocation9] sm:$0x3] %v103_v35  ;;  %vm139_vm8 = vmpackc.low %vm138_vm7, %vm138_vm7 }
  0x2d   :  { %v140_v36 = vsel %vm139_vm8, 16711935, %v279_v32 }
  0x2e   :  { %v142_v37 = vpack.c.b8 %v140_v36, %v140_v36 }
  0x30   :  { %vm143_vm9 = vnez %v142_v37 }
  0x31   :  { %v144_v38 = vsel %vm143_vm9, 16843009, %v279_v32 }
  0x32   :  { %146 = vst [vmem:[#allocation9 + $0x2] sm:$0x3] %v144_v38 }
  0x33   :  { %159 = dma.vmem_to_hbm [thread:$0]  %s152_s11, 64, %s154_s14, [#allocation4], %s281_s15, %s281_s15, %s282_s16  }
  0x34   :  { %272 = dma.done.wait [#allocation4], 64  }
  0x35   :  { %273 = vsyncadd [#allocation4], 4294967232 }
  0x36   :  { %164 = vsyncpa [#allocation3], 1 }
  0x37   :  { %165 = vsyncpa [#allocation8], 1 }
  0x38   :  { %166 = vsyncpa [#allocation4], 1 }
  0x39   :  { %167 = vsyncpa [#allocation5], 1 }

</bundles_post_ra>
